<compile_context>
chip_gen: v6e
topology: v6e:2x2x1
jax: 0.10.0
libtpu: 0.0.40
codegen_flags: <defaults>
</compile_context>

<pallas_src>
import jax
import jax.numpy as jnp
from jax.experimental import pallas as pl
from jax.experimental.pallas import tpu as pltpu


def _round_up(x, m):
    return ((x + m - 1) // m) * m


def critic_kernel(state_ref, action_ref,
                  w1s_ref, w1a_ref, b1_ref,
                  w2_ref, b2_ref,
                  w3_ref, b3_ref,
                  out_ref):
    # linear1, split over the concatenated feature axis (no in-kernel concat), + ReLU
    h1 = (jnp.dot(state_ref[...], w1s_ref[...], preferred_element_type=jnp.float32)
          + jnp.dot(action_ref[...], w1a_ref[...], preferred_element_type=jnp.float32)
          + b1_ref[...])
    h1 = jnp.maximum(h1, 0.0)

    # dropout (eval) -> identity

    # linear2 + ReLU
    h2 = jnp.dot(h1, w2_ref[...], preferred_element_type=jnp.float32) + b2_ref[...]
    h2 = jnp.maximum(h2, 0.0)

    # dropout (eval) -> identity

    # linear3: out_features == 1, so do it as a broadcast multiply + lane reduction
    # instead of a zero-padded matmul; output block is a narrow (tb, 1) column.
    q = jnp.sum(h2 * w3_ref[...], axis=-1, keepdims=True) + b3_ref[...]
    out_ref[...] = q.astype(out_ref.dtype)


def prepare_params(params, input_dim):
    """One-time weight prep (hoisted out of the per-call hot path)."""
    w1, b1, w2, b2, w3, b3 = params
    w1s = w1[:input_dim, :]       # (input_dim, hidden)
    w1a = w1[input_dim:, :]       # (action_dim, hidden)
    w3t = w3.T                    # (1, hidden) row for the lane reduction
    return (w1s, w1a, b1, w2, b2, w3t, b3)


def critic_forward(state, action, prepared_params, *, tile_b=4096):
    """Fused Critic forward. state: (B, input_dim), action: (B, action_dim) -> (B, 1)."""
    w1s, w1a, b1, w2, b2, w3t, b3 = prepared_params
    B, input_dim = state.shape
    action_dim = action.shape[1]

    # Batch tile: sublane-aligned, capped at tile_b, and small enough that the grid has
    # >= 2 steps whenever B > 8, so both v7x TensorCores get work.  Tiles are tiny
    # (< 1 MiB double-buffered) so VMEM is never a constraint on any generation.
    half = _round_up(max(1, pl.cdiv(B, 2)), 8)
    tb = _round_up(max(8, min(tile_b, half)), 8)
    grid = (pl.cdiv(B, tb),)

    def batch_spec(feat):
        return pl.BlockSpec((tb, feat), lambda i: (i, 0))

    def const_spec(arr):
        # Full-array block, constant index map -> stays resident in VMEM across steps.
        return pl.BlockSpec(arr.shape, lambda i: (0, 0))

    out = pl.pallas_call(
        critic_kernel,
        out_shape=jax.ShapeDtypeStruct((B, 1), jnp.float32),
        grid=grid,
        in_specs=[
            batch_spec(input_dim),       # state tile   (ragged last block handled by Pallas)
            batch_spec(action_dim),      # action tile
            const_spec(w1s),
            const_spec(w1a),
            const_spec(b1),
            const_spec(w2),
            const_spec(b2),
            const_spec(w3t),
            const_spec(b3),
        ],
        out_specs=pl.BlockSpec((tb, 1), lambda i: (i, 0)),
        compiler_params=pltpu.CompilerParams(
            dimension_semantics=("parallel",)),
    )(state, action, w1s, w1a, b1, w2, b2, w3t, b3)

    return out


def init_params(key, input_dim, output_dim, hidden_dim):
    """Deterministic PyTorch-style uniform(-1/sqrt(fan_in), 1/sqrt(fan_in)) init."""
    def linear(key, fan_in, fan_out):
        kw, kb = jax.random.split(key)
        bound = 1.0 / jnp.sqrt(float(fan_in))
        # stored as (in_features, out_features) -> y = x @ W + b
        w = jax.random.uniform(kw, (fan_in, fan_out), jnp.float32, -bound, bound)
        b = jax.random.uniform(kb, (1, fan_out), jnp.float32, -bound, bound)
        return w, b

    k1, k2, k3 = jax.random.split(key, 3)
    w1, b1 = linear(k1, input_dim + output_dim, hidden_dim)
    w2, b2 = linear(k2, hidden_dim, hidden_dim)
    w3, b3 = linear(k3, hidden_dim, 1)
    return (w1, b1, w2, b2, w3, b3)


def critic_reference(state, action, params):
    """Pure-JAX reference for correctness checking."""
    w1, b1, w2, b2, w3, b3 = params
    x = jnp.concatenate([state, action], axis=1)
    x = jnp.maximum(x @ w1 + b1, 0.0)
    x = jnp.maximum(x @ w2 + b2, 0.0)
    return x @ w3 + b3


if __name__ == "__main__":
    # Small shapes consistent with the module: state dim 16, action dim 8, hidden 32.
    batch, input_dim, output_dim, hidden_dim = 8, 16, 8, 32

    key = jax.random.PRNGKey(0)
    k_state, k_action, k_params = jax.random.split(key, 3)

    params = init_params(k_params, input_dim, output_dim, hidden_dim)
    prepped = prepare_params(params, input_dim)

    # Primary check: small aligned batch.
    state = jax.random.normal(k_state, (batch, input_dim), jnp.float32)
    action = jax.random.normal(k_action, (batch, output_dim), jnp.float32)
    out = jax.block_until_ready(critic_forward(state, action, prepped))
    ref = critic_reference(state, action, params)
    assert out.shape == (batch, 1), out.shape
    assert jnp.allclose(out, ref, atol=2e-5, rtol=1e-5), "mismatch vs reference (aligned batch)"

    # Secondary check: ragged batch (exercises the un-padded, multi-step grid path).
    batch2 = 20
    k_state2, k_action2 = jax.random.split(jax.random.PRNGKey(1))
    state2 = jax.random.normal(k_state2, (batch2, input_dim), jnp.float32)
    action2 = jax.random.normal(k_action2, (batch2, output_dim), jnp.float32)
    out2 = jax.block_until_ready(critic_forward(state2, action2, prepped))
    ref2 = critic_reference(state2, action2, params)
    assert out2.shape == (batch2, 1), out2.shape
    assert jnp.allclose(out2, ref2, atol=2e-5, rtol=1e-5), "mismatch vs reference (ragged batch)"

    print("KERNEL_OK")
</pallas_src>

<mosaic_0001>
module attributes {stable_mosaic.version = 11 : i64} {
  func.func @critic_kernel(%arg0: i32, %arg1: memref<8x16xf32, #tpu.memory_space<vmem>>, %arg2: memref<8x8xf32, #tpu.memory_space<vmem>>, %arg3: memref<16x32xf32, #tpu.memory_space<vmem>>, %arg4: memref<8x32xf32, #tpu.memory_space<vmem>>, %arg5: memref<1x32xf32, #tpu.memory_space<vmem>>, %arg6: memref<32x32xf32, #tpu.memory_space<vmem>>, %arg7: memref<1x32xf32, #tpu.memory_space<vmem>>, %arg8: memref<1x32xf32, #tpu.memory_space<vmem>>, %arg9: memref<1x1xf32, #tpu.memory_space<vmem>>, %arg10: memref<8x1xf32, #tpu.memory_space<vmem>>) attributes {dimension_semantics = [#tpu.dimension_semantics<parallel>], iteration_bounds = array<i64: 1>, scalar_prefetch = 0 : i64, scratch_operands = 0 : i64, tpu.core_type = #tpu.core_type<tc>, window_params = [{transform_indices = @transform_0, window_bounds = array<i64: 8, 16>}, {transform_indices = @transform_1, window_bounds = array<i64: 8, 8>}, {pipeline_mode = #tpu.pipeline_mode<synchronous>, transform_indices = @transform_2, window_bounds = array<i64: 16, 32>}, {pipeline_mode = #tpu.pipeline_mode<synchronous>, transform_indices = @transform_3, window_bounds = array<i64: 8, 32>}, {pipeline_mode = #tpu.pipeline_mode<synchronous>, transform_indices = @transform_4, window_bounds = array<i64: 1, 32>}, {pipeline_mode = #tpu.pipeline_mode<synchronous>, transform_indices = @transform_5, window_bounds = array<i64: 32, 32>}, {pipeline_mode = #tpu.pipeline_mode<synchronous>, transform_indices = @transform_6, window_bounds = array<i64: 1, 32>}, {pipeline_mode = #tpu.pipeline_mode<synchronous>, transform_indices = @transform_7, window_bounds = array<i64: 1, 32>}, {pipeline_mode = #tpu.pipeline_mode<synchronous>, transform_indices = @transform_8, window_bounds = array<i64: 1, 1>}, {transform_indices = @transform_9, window_bounds = array<i64: 8, 1>}]} {
    %c0 = arith.constant 0 : index
    %c0_0 = arith.constant 0 : index
    %0 = vector.load %arg1[%c0, %c0_0] : memref<8x16xf32, #tpu.memory_space<vmem>>, vector<8x16xf32>
    %c0_1 = arith.constant 0 : index
    %c0_2 = arith.constant 0 : index
    %1 = vector.load %arg3[%c0_1, %c0_2] : memref<16x32xf32, #tpu.memory_space<vmem>>, vector<16x32xf32>
    %cst = arith.constant dense<0.000000e+00> : vector<8x32xf32>
    %2 = tpu.matmul %0, %1, %cst {dimension_numbers = #tpu.dot_dimension_numbers<[1], [0], [0], [1], [0, 0, 1, 1], [], []>} : vector<8x16xf32>, vector<16x32xf32>, vector<8x32xf32> -> vector<8x32xf32>
    %c0_3 = arith.constant 0 : index
    %c0_4 = arith.constant 0 : index
    %3 = vector.load %arg2[%c0_3, %c0_4] : memref<8x8xf32, #tpu.memory_space<vmem>>, vector<8x8xf32>
    %c0_5 = arith.constant 0 : index
    %c0_6 = arith.constant 0 : index
    %4 = vector.load %arg4[%c0_5, %c0_6] : memref<8x32xf32, #tpu.memory_space<vmem>>, vector<8x32xf32>
    %cst_7 = arith.constant dense<0.000000e+00> : vector<8x32xf32>
    %5 = tpu.matmul %3, %4, %cst_7 {dimension_numbers = #tpu.dot_dimension_numbers<[1], [0], [0], [1], [0, 0, 1, 1], [], []>} : vector<8x8xf32>, vector<8x32xf32>, vector<8x32xf32> -> vector<8x32xf32>
    %6 = arith.addf %2, %5 : vector<8x32xf32>
    %c0_8 = arith.constant 0 : index
    %c0_9 = arith.constant 0 : index
    %7 = vector.load %arg5[%c0_8, %c0_9] : memref<1x32xf32, #tpu.memory_space<vmem>>, vector<1x32xf32>
    %8 = vector.broadcast %7 : vector<1x32xf32> to vector<8x32xf32>
    %9 = arith.addf %6, %8 : vector<8x32xf32>
    %cst_10 = arith.constant 0.000000e+00 : f32
    %10 = vector.broadcast %cst_10 : f32 to vector<8x32xf32>
    %11 = arith.maximumf %9, %10 : vector<8x32xf32>
    %c0_11 = arith.constant 0 : index
    %c0_12 = arith.constant 0 : index
    %12 = vector.load %arg6[%c0_11, %c0_12] : memref<32x32xf32, #tpu.memory_space<vmem>>, vector<32x32xf32>
    %cst_13 = arith.constant dense<0.000000e+00> : vector<8x32xf32>
    %13 = tpu.matmul %11, %12, %cst_13 {dimension_numbers = #tpu.dot_dimension_numbers<[1], [0], [0], [1], [0, 0, 1, 1], [], []>} : vector<8x32xf32>, vector<32x32xf32>, vector<8x32xf32> -> vector<8x32xf32>
    %c0_14 = arith.constant 0 : index
    %c0_15 = arith.constant 0 : index
    %14 = vector.load %arg7[%c0_14, %c0_15] : memref<1x32xf32, #tpu.memory_space<vmem>>, vector<1x32xf32>
    %15 = vector.broadcast %14 : vector<1x32xf32> to vector<8x32xf32>
    %16 = arith.addf %13, %15 : vector<8x32xf32>
    %cst_16 = arith.constant 0.000000e+00 : f32
    %17 = vector.broadcast %cst_16 : f32 to vector<8x32xf32>
    %18 = arith.maximumf %16, %17 : vector<8x32xf32>
    %c0_17 = arith.constant 0 : index
    %c0_18 = arith.constant 0 : index
    %19 = vector.load %arg8[%c0_17, %c0_18] : memref<1x32xf32, #tpu.memory_space<vmem>>, vector<1x32xf32>
    %20 = vector.broadcast %19 : vector<1x32xf32> to vector<8x32xf32>
    %21 = arith.mulf %18, %20 : vector<8x32xf32>
    %cst_19 = arith.constant dense<0.000000e+00> : vector<8xf32>
    %22 = vector.multi_reduction <add>, %21, %cst_19 [1] : vector<8x32xf32> to vector<8xf32>
    %23 = vector.shape_cast %22 : vector<8xf32> to vector<8x1xf32>
    %c0_20 = arith.constant 0 : index
    %c0_21 = arith.constant 0 : index
    %24 = vector.load %arg9[%c0_20, %c0_21] : memref<1x1xf32, #tpu.memory_space<vmem>>, vector<1x1xf32>
    %25 = vector.broadcast %24 : vector<1x1xf32> to vector<8x1xf32>
    %26 = arith.addf %23, %25 : vector<8x1xf32>
    %c0_22 = arith.constant 0 : index
    %c0_23 = arith.constant 0 : index
    %27 = vector.load %arg10[%c0_22, %c0_23] : memref<8x1xf32, #tpu.memory_space<vmem>>, vector<8x1xf32>
    tpu.vector_store %arg10[%c0_22, %c0_23], %26 {strides = array<i32>} : memref<8x1xf32, #tpu.memory_space<vmem>>, vector<8x1xf32>,
    return
  }
  func.func @transform_0(%arg0: i32) -> (i32, i32) {
    %c0_i32 = arith.constant 0 : i32
    %c0_i32_0 = arith.constant 0 : i32
    return %arg0, %c0_i32 : i32, i32
  }
  func.func @transform_1(%arg0: i32) -> (i32, i32) {
    %c0_i32 = arith.constant 0 : i32
    %c0_i32_0 = arith.constant 0 : i32
    return %arg0, %c0_i32 : i32, i32
  }
  func.func @transform_2(%arg0: i32) -> (i32, i32) {
    %c0_i32 = arith.constant 0 : i32
    %c0_i32_0 = arith.constant 0 : i32
    %c0_i32_1 = arith.constant 0 : i32
    return %c0_i32, %c0_i32_0 : i32, i32
  }
  func.func @transform_3(%arg0: i32) -> (i32, i32) {
    %c0_i32 = arith.constant 0 : i32
    %c0_i32_0 = arith.constant 0 : i32
    %c0_i32_1 = arith.constant 0 : i32
    return %c0_i32, %c0_i32_0 : i32, i32
  }
  func.func @transform_4(%arg0: i32) -> (i32, i32) {
    %c0_i32 = arith.constant 0 : i32
    %c0_i32_0 = arith.constant 0 : i32
    %c0_i32_1 = arith.constant 0 : i32
    return %c0_i32, %c0_i32_0 : i32, i32
  }
  func.func @transform_5(%arg0: i32) -> (i32, i32) {
    %c0_i32 = arith.constant 0 : i32
    %c0_i32_0 = arith.constant 0 : i32
    %c0_i32_1 = arith.constant 0 : i32
    return %c0_i32, %c0_i32_0 : i32, i32
  }
  func.func @transform_6(%arg0: i32) -> (i32, i32) {
    %c0_i32 = arith.constant 0 : i32
    %c0_i32_0 = arith.constant 0 : i32
    %c0_i32_1 = arith.constant 0 : i32
    return %c0_i32, %c0_i32_0 : i32, i32
  }
  func.func @transform_7(%arg0: i32) -> (i32, i32) {
    %c0_i32 = arith.constant 0 : i32
    %c0_i32_0 = arith.constant 0 : i32
    %c0_i32_1 = arith.constant 0 : i32
    return %c0_i32, %c0_i32_0 : i32, i32
  }
  func.func @transform_8(%arg0: i32) -> (i32, i32) {
    %c0_i32 = arith.constant 0 : i32
    %c0_i32_0 = arith.constant 0 : i32
    %c0_i32_1 = arith.constant 0 : i32
    return %c0_i32, %c0_i32_0 : i32, i32
  }
  func.func @transform_9(%arg0: i32) -> (i32, i32) {
    %c0_i32 = arith.constant 0 : i32
    %c0_i32_0 = arith.constant 0 : i32
    return %arg0, %c0_i32 : i32, i32
  }
}

</mosaic_0001>

<bundles_post_ra>
// kernel: tpu_custom_call.1
= control target key start
LH: loop header
LB: loop body
LE: loop exit
PB: predicated region body
PF: predicated region fallthrough
CT: control target
= control target key end

     0   :  { %s616_s0 = inlined_call_operand.hbm [shape: f32[8,16], index: 0, kind: input, shape index: {}]   ;;  %s617_s1 = inlined_call_operand.hbm [shape: f32[8,8], index: 1, kind: input, shape index: {}]   ;;  %s618_s2 = inlined_call_operand.hbm [shape: f32[16,32], index: 2, kind: input, shape index: {}]   ;;  %s619_s3 = inlined_call_operand.hbm [shape: f32[8,32], index: 3, kind: input, shape index: {}]   ;;  %s620_s4 = inlined_call_operand.vmem [shape: f32[1,32], index: 4, kind: input, shape index: {}]   ;;  %s621_s5 = inlined_call_operand.hbm [shape: f32[32,32], index: 5, kind: input, shape index: {}]   ;;  %s622_s6 = inlined_call_operand.vmem [shape: f32[1,32], index: 6, kind: input, shape index: {}]   ;;  %s623_s7 = inlined_call_operand.vmem [shape: f32[1,32], index: 7, kind: input, shape index: {}]   ;;  %s624_s8 = inlined_call_operand.<no memory space> [shape: f32[1,1], index: 8, kind: input, shape index: {}]   ;;  %s625_s9 = inlined_call_operand.vmem [shape: f32[8,1], index: 9, kind: output, shape index: {}]  }
   0x1   :  { %v14_v0 = vstv %s624_s8 }
   0x2   :  { %15 = vst [vmem:[#allocation2] sm:$0x1] %v14_v0 }
   0x3   :  { %16 = vsyncpa [#allocation4], 0 }
   0x4   :  { %17 = vsyncpa [#allocation6], 0 }
   0x5   :  { %18 = vsyncpa [#allocation9], 0  ;;  %s527_s11 = smov [#allocation5]   ;;  %s528_s13 = smov [#allocation8]  }
   0x6   :  { %s35_s12 = sshll.u32 %s527_s11, 4  ;;  %s57_s14 = sshll.u32 %s528_s13, 4  ;;  %s36_s12 = int_to_ptr.vmem [resolvable:$true] %s35_s12  ;;  %s58_s14 = int_to_ptr.vmem [resolvable:$true] %s57_s14 }
   0x7   :  { %s429_s15 = scalar_lea.vmem %s36_s12, 128  ;;  %p434_p1 = scmp.lt.s32.totalorder %s36_s12, %s36_s12 }
   0x8   :  { %p430_p0 = scmp.ne.s32.totalorder %s36_s12, %s429_s15  ;;  %p435_p2 = scmp.lt.s32.totalorder %s429_s15, %s429_s15 }
   0xa   :  { %p436_p3 = por %p435_p2, %p434_p1 }
   0xc   :  { %p437_p4 = pnand %p436_p3, %p430_p0 }
   0xe   :  { %440 = shalt.err (!%p437_p4)
}
   0xf   :  { %38 = dma.hbm_to_vmem [thread:$0]  %s617_s1, 128, %s36_s12, [#allocation6]  }
  0x10   :  { %s449_s8 = scalar_lea.vmem %s58_s14, 128  ;;  %p454_p6 = scmp.lt.s32.totalorder %s58_s14, %s58_s14 }
  0x11   :  { %p450_p5 = scmp.ne.s32.totalorder %s58_s14, %s449_s8  ;;  %p455_p7 = scmp.lt.s32.totalorder %s449_s8, %s449_s8 }
  0x13   :  { %p456_p8 = por %p455_p7, %p454_p6 }
  0x15   :  { %p457_p9 = pnand %p456_p8, %p450_p5 }
  0x17   :  { %460 = shalt.err (!%p457_p9)
}
  0x18   :  { %60 = dma.hbm_to_vmem [thread:$0]  %s619_s3, 128, %s58_s14, [#allocation9]  }
  0x19   :  { %s529_s20 = smov [#allocation3]   ;;  %s530_s22 = smov [#allocation7]  }
  0x1a   :  { %s25_s21 = sshll.u32 %s529_s20, 4  ;;  %s44_s23 = sshll.u32 %s530_s22, 4  ;;  %s26_s21 = int_to_ptr.vmem [resolvable:$true] %s25_s21  ;;  %s45_s23 = int_to_ptr.vmem [resolvable:$true] %s44_s23 }
  0x1b   :  { %s469_s24 = scalar_lea.vmem %s26_s21, 128  ;;  %p474_p11 = scmp.lt.s32.totalorder %s26_s21, %s26_s21 }
  0x1c   :  { %p470_p10 = scmp.ne.s32.totalorder %s26_s21, %s469_s24  ;;  %p475_p12 = scmp.lt.s32.totalorder %s469_s24, %s469_s24 }
  0x1e   :  { %p476_p13 = por %p475_p12, %p474_p11 }
  0x20   :  { %p477_p0 = pnand %p476_p13, %p470_p10 }
  0x22   :  { %480 = shalt.err (!%p477_p0)
}
  0x23   :  { %28 = dma.hbm_to_vmem [thread:$0]  %s616_s0, 128, %s26_s21, [#allocation4]  }
  0x24   :  { %s489_s26 = scalar_lea.vmem %s45_s23, 256  ;;  %p494_p2 = scmp.lt.s32.totalorder %s45_s23, %s45_s23 }
  0x25   :  { %p490_p1 = scmp.ne.s32.totalorder %s45_s23, %s489_s26  ;;  %p495_p3 = scmp.lt.s32.totalorder %s489_s26, %s489_s26 }
  0x27   :  { %p496_p4 = por %p495_p3, %p494_p2 }
  0x29   :  { %p497_p5 = pnand %p496_p4, %p490_p1 }
  0x2b   :  { %500 = shalt.err (!%p497_p5)
}
  0x2c   :  { %s531_s3 = smov 128   ;;  %s532_s27 = smov 8  }
  0x2d   :  { %50 = dma.hbm_to_vmem [thread:$0]  %s618_s2, 256, %s45_s23, [#allocation6], %s531_s3, %s531_s3, %s532_s27  }
  0x2e   :  { %s533_s30 = smov [#allocation10]  }
  0x2f   :  { %s68_s10 = sshll.u32 %s533_s30, 4  ;;  %s69_s10 = int_to_ptr.vmem [resolvable:$true] %s68_s10 }
  0x30   :  { %s509_s11 = scalar_lea.vmem %s69_s10, 512  ;;  %p514_p7 = scmp.lt.s32.totalorder %s69_s10, %s69_s10 }
  0x31   :  { %p510_p6 = scmp.ne.s32.totalorder %s69_s10, %s509_s11  ;;  %p515_p8 = scmp.lt.s32.totalorder %s509_s11, %s509_s11 }
  0x33   :  { %p516_p9 = por %p515_p8, %p514_p7 }
  0x35   :  { %p517_p10 = pnand %p516_p9, %p510_p6 }
  0x37   :  { %520 = shalt.err (!%p517_p10)
}
  0x38   :  { %74 = dma.hbm_to_vmem [thread:$0]  %s621_s5, 512, %s69_s10, [#allocation9], %s531_s3, %s531_s3, %s532_s27  }
  0x39   :  { %521 = dma.done.wait [#allocation4], 128  }
  0x3a   :  { %522 = vsyncadd [#allocation4], 4294967168 }
  0x3b   :  { %523 = dma.done.wait [#allocation6], 384  }
  0x3c   :  { %524 = vsyncadd [#allocation6], 4294966912 }
  0x3d   :  { %525 = dma.done.wait [#allocation9], 640  }
  0x3e   :  { %526 = vsyncadd [#allocation9], 4294966656  ;;  %v534_v1 = vmov 0.0   ;;  %vm535_vm0 = vmmov 0   ;;  %vm101_vm1 = vcmask 64512   ;;  %v100_v2 = vld [vmem:[#allocation8] sm:$0xff] }
  0x3f   :  { %389 = vmatprep.subr.mxu1 %v534_v1  ;;  %391 = vmatprep.mubr.msk.f32.mxu1 %vm535_vm0, %v534_v1  ;;  %v99_v3 = vld [vmem:[#allocation5] sm:$0xff]  ;;  %v98_v4 = vld [vmem:[#allocation7 + $0x8] sm:$0xff]  ;;  %v97_v5 = vld [vmem:[#allocation7] sm:$0xff]  ;;  %vm175_vm2 = vcmask 130048   ;;  %vm269_vm3 = vcmask 261120   ;;  %vm363_vm4 = vcmask 7168  }
  0x40   :  { %401 = vmatprep.subr.mxu0 %v534_v1  ;;  %409 = vmatprep.mubr.msk.f32.mxu0 %vm535_vm0, %v534_v1  ;;  %v96_v6 = vld [vmem:[#allocation3] sm:$0xff]  ;;  %v260_v8 = vld [vmem:[#allocation10 + $0x10] sm:$0xff]  ;;  %v259_v9 = vld [vmem:[#allocation10 + $0x8] sm:$0xff] }
  0x41   :  { %390 = vmatpush3.msra.mxu1 %v100_v2  ;;  %v261_v7 = vld [vmem:[#allocation10 + $0x18] sm:$0xff]  ;;  %v258_v10 = vld [vmem:[#allocation10] sm:$0xff]  ;;  %v374_v14 = vld [vmem:[%s620_s4] ss:$0 sm:$0xff] }
  0x42   :  { %392 = vmatmul.mubr.msk.f32.vlgmr.msra.gmra.mxu1 %vm101_vm1, %v99_v3  ;;  %394 = vmatprep.subr.mxu1 %v534_v1  ;;  %v375_v19 = vld [vmem:[%s622_s6] ss:$0 sm:$0xff] }
  0x43   :  { %395 = vmatpush3.msra.mxu1 %v98_v4  ;;  %398 = vmatprep.mubr.msk.f32.mxu1 %vm535_vm0, %v534_v1  ;;  %v377_v23 = vld [vmem:[%s623_s7] ss:$0 sm:$0xff] }
  0x44   :  { %396 = vmatprep.subr.mxu1 %v534_v1  ;;  %402 = vmatpush3.msra.mxu0 %v261_v7  ;;  %v378_v27 = vld [vmem:[#allocation2] ss:$0 sm:$0xff] }
  0x45   :  { %397 = vmatpush3.msra.mxu1 %v97_v5  ;;  %403 = vmatprep.subr.mxu0 %v534_v1 }
  0x46   :  { %399 = vmatmul.mubr.msk.f32.vlgmr.msra.gmra.mxu1 %vm175_vm2, %v96_v6  ;;  %404 = vmatpush3.msra.mxu0 %v260_v8 }
  0x47   :  { %405 = vmatprep.subr.mxu0 %v534_v1 }
  0x48   :  { %406 = vmatpush3.msra.mxu0 %v259_v9 }
  0x49   :  { %407 = vmatprep.subr.mxu0 %v534_v1 }
  0x4a   :  { %408 = vmatpush3.msra.mxu0 %v258_v10 }
 0x102   :  { %v171_v11 = vpop.f32.mrf.mxu1 }
 0x104   :  { %v393_v12 = vpop.f32.mrf.mxu1 }
 0x106   :  { %v245_v13 = vpop.f32.mrf.mxu1 }
 0x107   :  { %v246_v15 = vadd.f32 %v245_v13, %v171_v11 }
 0x108   :  { %v400_v16 = vpop.f32.mrf.mxu1 }
 0x109   :  { %v256_v17 = vadd.f32 %v374_v14, %v246_v15 }
 0x10b   :  { %v257_v18 = vmax.f32 %v256_v17, 0.0 }
 0x10d   :  { %410 = vmatmul.mubr.msk.f32.vlgmr.msra.gmra.mxu0 %vm269_vm3, %v257_v18 }
 0x1cd   :  { %v339_v20 = vpop.f32.mrf.mxu0 }
 0x1ce   :  { %v340_v21 = vadd.f32 %v375_v19, %v339_v20 }
 0x1cf   :  { %v411_v22 = vpop.f32.mrf.mxu0 }
 0x1d0   :  { %v343_v24 = vmax.f32 %v340_v21, 0.0 }
 0x1d2   :  { %v351_v25 = vmul.f32 %v377_v23, %v343_v24 }
 0x1d4   :  { %v352_v26 = vsel %vm269_vm3, %v351_v25, 0.0 }
 0x1d5   :  { %353 = vadd.xlane.f32.xlu0 %v352_v26 }
 0x25e   :  { %v354_v28 = vpop.xlane.xlu0 %353 }
 0x25f   :  { %v362_v29 = vadd.f32 %v378_v27, %v354_v28 }
 0x261   :  { %364 = vst.msk [vmem:[%s625_s9] sm:$0xff] %vm363_vm4, %v362_v29 }
 0x262   :  { %369 = vsyncpa [#allocation4], 1 }
 0x263   :  { %370 = vsyncpa [#allocation6], 1 }
 0x264   :  { %371 = vsyncpa [#allocation9], 1 }

</bundles_post_ra>
